<compile_context>
chip_gen: v7x
topology: tpu7x:2x2x1
jax: 0.10.0
libtpu: 0.0.40
codegen_flags: <defaults>
</compile_context>

<pallas_src>
import functools

import numpy as np
import jax
import jax.numpy as jnp
from jax.experimental import pallas as pl
from jax.experimental.pallas import tpu as pltpu


# -----------------------------------------------------------------------------
# NATTEN window-start / bias-start index helpers (host-side index arithmetic,
# transcribed from NATTEN's reference implementation).
# -----------------------------------------------------------------------------
def _get_window_start(index, length, kernel_size, dilation):
    nh = kernel_size // 2
    if dilation <= 1:
        return max(index - nh, 0) + (index + nh >= length) * (length - index - nh - 1)
    ni = index - nh * dilation
    if ni < 0:
        return index % dilation
    if index + nh * dilation >= length:
        imodd = index % dilation
        a = (length // dilation) * dilation
        b = length - a
        if imodd < b:
            return length - b + imodd - 2 * nh * dilation
        return a + imodd - kernel_size * dilation
    return ni


def _get_pb_start(index, length, kernel_size, dilation):
    nh = kernel_size // 2
    if dilation <= 1:
        return (nh + (index < nh) * (nh - index)
                + (index + nh >= length) * (length - index - 1 - nh))
    if index - nh * dilation < 0:
        return kernel_size - 1 - (index // dilation)
    if index + nh * dilation >= length:
        return (length - index - 1) // dilation
    return nh


def _build_bias_mask(rpb, H, W, kernel_size, dilation, neg=-1e30):
    """Dense (num_heads, H*W, H*W) bf16 table: rpb at neighborhood entries,
    -1e30 elsewhere.  Vectorized numpy (no per-pixel Python quadruple loop)."""
    rpb = np.asarray(rpb, dtype=np.float32)
    K = kernel_size
    num_heads = rpb.shape[0]

    si = np.array([_get_window_start(i, H, K, dilation) for i in range(H)], np.int64)
    sj = np.array([_get_window_start(j, W, K, dilation) for j in range(W)], np.int64)
    pi = np.array([_get_pb_start(i, H, K, dilation) for i in range(H)], np.int64)
    pj = np.array([_get_pb_start(j, W, K, dilation) for j in range(W)], np.int64)
    ar = np.arange(K, dtype=np.int64)

    key_row = si[:, None] + ar[None, :] * dilation                     # (H, K)
    key_col = sj[:, None] + ar[None, :] * dilation                     # (W, K)
    kidx = key_row[:, None, :, None] * W + key_col[None, :, None, :]   # (H, W, K, K)

    bias = rpb[:, (pi[:, None] + ar[None, :])[:, None, :, None],
                  (pj[:, None] + ar[None, :])[None, :, None, :]]       # (nh, H, W, K, K)

    bm = np.full((num_heads, H * W, H * W), neg, dtype=np.float32)
    qidx = np.arange(H * W, dtype=np.int64)
    bm[:, qidx[:, None], kidx.reshape(H * W, K * K)] = bias.reshape(num_heads, H * W, K * K)
    return jnp.asarray(bm, dtype=jnp.bfloat16)


def _pick_tq(hw, hd, budget_bytes=36 * 1024 * 1024):
    """Largest query tile (<=128, multiple of 8, divisor of hw) whose per-step
    working set fits the VMEM budget (sized for v7x's 64 MiB)."""
    for tq in (128, 64, 32, 16, 8):
        if tq > hw or hw % tq != 0:
            continue
        fp = (2 * tq * hw * 2        # bf16 bias tile, double-buffered
              + 2 * tq * hw * 4      # f32 score + exp temporaries
              + 2 * 2 * hw * hd * 2  # bf16 k/v, double-buffered
              + 4 * tq * hd * 4)     # q / out tiles
        if fp <= budget_bytes:
            return tq
    return hw                        # tiny or oddly-shaped hw: single full tile


# -----------------------------------------------------------------------------
# Pallas kernel: one (head, query-tile, batch) grid cell.
#   q_ref : (TQ, hd)  bf16      k_ref/v_ref : (HW, hd) bf16
#   bm_ref: (TQ, HW)  bf16      o_ref       : (TQ, hd) f32
# -----------------------------------------------------------------------------
def _swa_kernel(q_ref, k_ref, v_ref, bm_ref, o_ref, *, scale):
    q = q_ref[...]
    k = k_ref[...]
    # bf16 x bf16 -> f32 accumulation on the MXU (single pass).
    s = jnp.dot(q, k.T, preferred_element_type=jnp.float32)          # (TQ, HW)
    # Scale + relative-position bias / neighborhood mask, in f32.
    s = s * scale + bm_ref[...].astype(jnp.float32)
    m = jnp.max(s, axis=-1, keepdims=True)
    p = jnp.exp(s - m)                                               # f32; masked -> 0
    l = jnp.sum(p, axis=-1, keepdims=True)
    o = jnp.dot(p.astype(v_ref.dtype), v_ref[...],
                preferred_element_type=jnp.float32)                  # (TQ, hd)
    o_ref[...] = (o * pl.reciprocal(l, approx=True)).astype(o_ref.dtype)


# -----------------------------------------------------------------------------
# Module-equivalent wrapper.
# -----------------------------------------------------------------------------
class SlidingWindowAttentionPallas:
    def __init__(self, dim, kernel_size, num_heads, qk_scale=None, dilation=None,
                 key=None):
        assert kernel_size > 1 and kernel_size % 2 == 1
        self.num_heads = num_heads
        self.head_dim = dim // num_heads
        self.scale = qk_scale or self.head_dim ** (-0.5)
        self.kernel_size = kernel_size
        if isinstance(dilation, str):
            self.dilation = None
        else:
            assert dilation is None or dilation >= 1
            self.dilation = dilation or 1
        # trunc_normal_(std=0.02, a=-2, b=2): truncation at 100 sigma is a no-op,
        # so a plain scaled normal is an exact-distribution init.
        if key is None:
            key = jax.random.PRNGKey(1)
        self.rpb = 0.02 * jax.random.normal(
            key, (num_heads, 2 * kernel_size - 1, 2 * kernel_size - 1), jnp.float32)
        # Bias/mask table cache, keyed by (H, W, K, dilation).  rpb is fixed
        # after init here; invalidate this cache if rpb is ever updated.
        self._bm_cache = {}

    def _bias_mask(self, H, W, dilation):
        key = (H, W, self.kernel_size, dilation)
        if key not in self._bm_cache:
            self._bm_cache[key] = _build_bias_mask(
                self.rpb, H, W, self.kernel_size, dilation)
        return self._bm_cache[key]

    def __call__(self, x):
        B, C, H, W = x.shape
        nh, hd, K = self.num_heads, self.head_dim, self.kernel_size
        dilation = self.dilation
        if dilation is None:
            dilation = max(min(H, W) // K, 1)
        HW = H * W

        # x -> (3, B, nh, H, W, hd), mirroring the torch reshape/permute, then
        # cast q/k/v to bf16 (halves their HBM traffic; accumulation stays f32).
        qkv = x.reshape(B, 3, nh, hd, H, W).transpose(1, 0, 2, 4, 5, 3)
        q = qkv[0].reshape(B, nh, HW, hd).astype(jnp.bfloat16)
        k = qkv[1].reshape(B, nh, HW, hd).astype(jnp.bfloat16)
        v = qkv[2].reshape(B, nh, HW, hd).astype(jnp.bfloat16)

        bm = self._bias_mask(H, W, dilation)                 # (nh, HW, HW) bf16, cached

        TQ = _pick_tq(HW, hd)
        NQ = HW // TQ if HW % TQ == 0 else 1

        q_spec = pl.BlockSpec((None, None, TQ, hd), lambda h, qt, b: (b, h, qt, 0))
        kv_spec = pl.BlockSpec((None, None, HW, hd), lambda h, qt, b: (b, h, 0, 0))
        # Bias index_map does not depend on b; with b innermost the (TQ, HW)
        # bias tile is fetched once per (head, query-tile) and reused across B.
        bm_spec = pl.BlockSpec((None, TQ, HW), lambda h, qt, b: (h, qt, 0))

        out = pl.pallas_call(
            functools.partial(_swa_kernel, scale=self.scale),
            out_shape=jax.ShapeDtypeStruct((B, nh, HW, hd), x.dtype),
            grid=(nh, NQ, B),
            in_specs=[q_spec, kv_spec, kv_spec, bm_spec],
            out_specs=pl.BlockSpec((None, None, TQ, hd), lambda h, qt, b: (b, h, qt, 0)),
            compiler_params=pltpu.CompilerParams(
                dimension_semantics=("parallel", "parallel", "arbitrary"),
                vmem_limit_bytes=48 * 1024 * 1024),
        )(q, k, v, bm)

        out = out.reshape(B, nh, H, W, hd)
        out = out.transpose(0, 1, 4, 2, 3).reshape(B, C // 3, H, W)
        return out


# -----------------------------------------------------------------------------
# Pure numpy reference (direct transcription of natten2dqkrpb / natten2dav).
# -----------------------------------------------------------------------------
def _reference_forward(x, rpb, num_heads, head_dim, K, dilation, scale):
    x = np.asarray(x, dtype=np.float64)
    rpb = np.asarray(rpb, dtype=np.float64)
    B, C, H, W = x.shape
    qkv = x.reshape(B, 3, num_heads, head_dim, H, W).transpose(1, 0, 2, 4, 5, 3)
    q, k, v = qkv[0] * scale, qkv[1], qkv[2]
    attn = np.zeros((B, num_heads, H, W, K * K), dtype=np.float64)
    for i in range(H):
        si = _get_window_start(i, H, K, dilation)
        pi = _get_pb_start(i, H, K, dilation)
        for j in range(W):
            sj = _get_window_start(j, W, K, dilation)
            pj = _get_pb_start(j, W, K, dilation)
            for ki in range(K):
                for kj in range(K):
                    attn[:, :, i, j, ki * K + kj] = (
                        q[:, :, i, j, :] * k[:, :, si + ki * dilation, sj + kj * dilation, :]
                    ).sum(-1) + rpb[None, :, pi + ki, pj + kj]
    attn = attn - attn.max(-1, keepdims=True)
    attn = np.exp(attn)
    attn = attn / attn.sum(-1, keepdims=True)
    out = np.zeros((B, num_heads, H, W, head_dim), dtype=np.float64)
    for i in range(H):
        si = _get_window_start(i, H, K, dilation)
        for j in range(W):
            sj = _get_window_start(j, W, K, dilation)
            for ki in range(K):
                for kj in range(K):
                    out[:, :, i, j, :] += (
                        attn[:, :, i, j, ki * K + kj, None]
                        * v[:, :, si + ki * dilation, sj + kj * dilation, :]
                    )
    return out.transpose(0, 1, 4, 2, 3).reshape(B, C // 3, H, W)


if __name__ == "__main__":
    # HW=256 -> TQ=128, NQ=2: exercises query tiling + bias-tile reuse across B.
    B, num_heads, head_dim, H, W, K = 2, 2, 16, 16, 16, 3
    dim = num_heads * head_dim                      # 32 -> x has 3*dim=96 channels
    key = jax.random.PRNGKey(0)
    kx, kr = jax.random.split(key)
    x = jax.random.normal(kx, (B, 3 * dim, H, W), dtype=jnp.float32)

    mod = SlidingWindowAttentionPallas(dim=dim, kernel_size=K, num_heads=num_heads,
                                       dilation=None, key=kr)
    out = mod(x)
    out = jax.block_until_ready(out)
    assert out.shape == (B, dim, H, W)

    ref = _reference_forward(x, mod.rpb, num_heads, head_dim, K, mod.dilation, mod.scale)
    # bf16 MXU inputs + approx reciprocal -> relax tolerance vs. the f32 version.
    np.testing.assert_allclose(np.asarray(out), ref, rtol=2e-2, atol=2e-2)
    print("KERNEL_OK")
</pallas_src>

<mosaic_0001>
module attributes {stable_mosaic.version = 11 : i64} {
  func.func @_swa_kernel(%arg0: i32, %arg1: i32, %arg2: i32, %arg3: memref<1x1x128x16xbf16, #tpu.memory_space<vmem>>, %arg4: memref<1x1x256x16xbf16, #tpu.memory_space<vmem>>, %arg5: memref<1x1x256x16xbf16, #tpu.memory_space<vmem>>, %arg6: memref<1x128x256xbf16, #tpu.memory_space<vmem>>, %arg7: memref<1x1x128x16xf32, #tpu.memory_space<vmem>>) attributes {dimension_semantics = [#tpu.dimension_semantics<parallel>, #tpu.dimension_semantics<parallel>, #tpu.dimension_semantics<arbitrary>], iteration_bounds = array<i64: 2, 2, 2>, scalar_prefetch = 0 : i64, scratch_operands = 0 : i64, tpu.core_type = #tpu.core_type<tc>, window_params = [{transform_indices = @transform_0, window_bounds = array<i64: 1, 1, 128, 16>}, {transform_indices = @transform_1, window_bounds = array<i64: 1, 1, 256, 16>}, {transform_indices = @transform_2, window_bounds = array<i64: 1, 1, 256, 16>}, {transform_indices = @transform_3, window_bounds = array<i64: 1, 128, 256>}, {transform_indices = @transform_4, window_bounds = array<i64: 1, 1, 128, 16>}]} {
    %c0 = arith.constant 0 : index
    %c0_0 = arith.constant 0 : index
    %c0_1 = arith.constant 0 : index
    %c0_2 = arith.constant 0 : index
    %0 = vector.load %arg3[%c0, %c0_0, %c0_1, %c0_2] : memref<1x1x128x16xbf16, #tpu.memory_space<vmem>>, vector<1x1x128x16xbf16>
    %1 = vector.shape_cast %0 : vector<1x1x128x16xbf16> to vector<128x16xbf16>
    %c0_3 = arith.constant 0 : index
    %c0_4 = arith.constant 0 : index
    %c0_5 = arith.constant 0 : index
    %c0_6 = arith.constant 0 : index
    %2 = vector.load %arg4[%c0_3, %c0_4, %c0_5, %c0_6] : memref<1x1x256x16xbf16, #tpu.memory_space<vmem>>, vector<1x1x256x16xbf16>
    %3 = vector.shape_cast %2 : vector<1x1x256x16xbf16> to vector<256x16xbf16>
    %4 = tpu.transpose %3, [1, 0] : vector<256x16xbf16> -> vector<16x256xbf16>
    %cst = arith.constant dense<0.000000e+00> : vector<128x256xf32>
    %5 = tpu.matmul %1, %4, %cst {dimension_numbers = #tpu.dot_dimension_numbers<[1], [0], [0], [1], [0, 0, 1, 1], [], []>} : vector<128x16xbf16>, vector<16x256xbf16>, vector<128x256xf32> -> vector<128x256xf32>
    %cst_7 = arith.constant 2.500000e-01 : f32
    %6 = vector.broadcast %cst_7 : f32 to vector<128x256xf32>
    %7 = arith.mulf %5, %6 : vector<128x256xf32>
    %c0_8 = arith.constant 0 : index
    %c0_9 = arith.constant 0 : index
    %c0_10 = arith.constant 0 : index
    %8 = vector.load %arg6[%c0_8, %c0_9, %c0_10] : memref<1x128x256xbf16, #tpu.memory_space<vmem>>, vector<1x128x256xbf16>
    %9 = vector.shape_cast %8 : vector<1x128x256xbf16> to vector<128x256xbf16>
    %10 = arith.extf %9 : vector<128x256xbf16> to vector<128x256xf32>
    %11 = arith.addf %7, %10 : vector<128x256xf32>
    %cst_11 = arith.constant dense<0xFF800000> : vector<128xf32>
    %12 = vector.multi_reduction <maximumf>, %11, %cst_11 [1] : vector<128x256xf32> to vector<128xf32>
    %13 = vector.shape_cast %12 : vector<128xf32> to vector<128x1xf32>
    %14 = vector.broadcast %13 : vector<128x1xf32> to vector<128x256xf32>
    %15 = arith.subf %11, %14 : vector<128x256xf32>
    %16 = math.exp %15 : vector<128x256xf32>
    %cst_12 = arith.constant dense<0.000000e+00> : vector<128xf32>
    %17 = vector.multi_reduction <add>, %16, %cst_12 [1] : vector<128x256xf32> to vector<128xf32>
    %18 = vector.shape_cast %17 : vector<128xf32> to vector<128x1xf32>
    %19 = arith.truncf %16 : vector<128x256xf32> to vector<128x256xbf16>
    %c0_13 = arith.constant 0 : index
    %c0_14 = arith.constant 0 : index
    %c0_15 = arith.constant 0 : index
    %c0_16 = arith.constant 0 : index
    %20 = vector.load %arg5[%c0_13, %c0_14, %c0_15, %c0_16] : memref<1x1x256x16xbf16, #tpu.memory_space<vmem>>, vector<1x1x256x16xbf16>
    %21 = vector.shape_cast %20 : vector<1x1x256x16xbf16> to vector<256x16xbf16>
    %cst_17 = arith.constant dense<0.000000e+00> : vector<128x16xf32>
    %22 = tpu.matmul %19, %21, %cst_17 {dimension_numbers = #tpu.dot_dimension_numbers<[1], [0], [0], [1], [0, 0, 1, 1], [], []>} : vector<128x256xbf16>, vector<256x16xbf16>, vector<128x16xf32> -> vector<128x16xf32>
    %23 = tpu.reciprocal %18 {approx = true} : vector<128x1xf32> -> vector<128x1xf32>
    %24 = vector.broadcast %23 : vector<128x1xf32> to vector<128x16xf32>
    %25 = arith.mulf %22, %24 : vector<128x16xf32>
    %c0_18 = arith.constant 0 : index
    %c0_19 = arith.constant 0 : index
    %c0_20 = arith.constant 0 : index
    %c0_21 = arith.constant 0 : index
    %26 = vector.load %arg7[%c0_18, %c0_19, %c0_20, %c0_21] : memref<1x1x128x16xf32, #tpu.memory_space<vmem>>, vector<1x1x128x16xf32>
    %27 = vector.shape_cast %26 : vector<1x1x128x16xf32> to vector<128x16xf32>
    %28 = vector.shape_cast %25 : vector<128x16xf32> to vector<1x1x128x16xf32>
    tpu.vector_store %arg7[%c0_18, %c0_19, %c0_20, %c0_21], %28 {strides = array<i32>} : memref<1x1x128x16xf32, #tpu.memory_space<vmem>>, vector<1x1x128x16xf32>,
    return
  }
  func.func @transform_0(%arg0: i32, %arg1: i32, %arg2: i32) -> (i32, i32, i32, i32) {
    %c0_i32 = arith.constant 0 : i32
    %c0_i32_0 = arith.constant 0 : i32
    return %arg2, %arg0, %arg1, %c0_i32 : i32, i32, i32, i32
  }
  func.func @transform_1(%arg0: i32, %arg1: i32, %arg2: i32) -> (i32, i32, i32, i32) {
    %c0_i32 = arith.constant 0 : i32
    %c0_i32_0 = arith.constant 0 : i32
    %c0_i32_1 = arith.constant 0 : i32
    return %arg2, %arg0, %c0_i32, %c0_i32_0 : i32, i32, i32, i32
  }
  func.func @transform_2(%arg0: i32, %arg1: i32, %arg2: i32) -> (i32, i32, i32, i32) {
    %c0_i32 = arith.constant 0 : i32
    %c0_i32_0 = arith.constant 0 : i32
    %c0_i32_1 = arith.constant 0 : i32
    return %arg2, %arg0, %c0_i32, %c0_i32_0 : i32, i32, i32, i32
  }
  func.func @transform_3(%arg0: i32, %arg1: i32, %arg2: i32) -> (i32, i32, i32) {
    %c0_i32 = arith.constant 0 : i32
    %c0_i32_0 = arith.constant 0 : i32
    return %arg0, %arg1, %c0_i32 : i32, i32, i32
  }
  func.func @transform_4(%arg0: i32, %arg1: i32, %arg2: i32) -> (i32, i32, i32, i32) {
    %c0_i32 = arith.constant 0 : i32
    %c0_i32_0 = arith.constant 0 : i32
    return %arg2, %arg0, %arg1, %c0_i32 : i32, i32, i32, i32
  }
}

</mosaic_0001>

<bundles_post_ra>
// kernel: tpu_custom_call.1
= control target key start
LH: loop header
LB: loop body
LE: loop exit
PB: predicated region body
PF: predicated region fallthrough
CT: control target
= control target key end

     0   :  { %s1954_s15 = smov 0   ;;  %s1956_s16 = smov 0   ;;  %s2312_s0 = inlined_call_operand.vmem [shape: bf16[2,2,256,16], index: 0, kind: input, shape index: {}]   ;;  %s2313_s1 = inlined_call_operand.vmem [shape: bf16[2,2,256,16], index: 1, kind: input, shape index: {}]   ;;  %s2314_s2 = inlined_call_operand.vmem [shape: bf16[2,2,256,16], index: 2, kind: input, shape index: {}]   ;;  %s2315_s3 = inlined_call_operand.vmem [shape: bf16[2,256,256], index: 3, kind: input, shape index: {}]   ;;  %s2316_s4 = inlined_call_operand.vmem [shape: f32[2,2,256,16], index: 4, kind: output, shape index: {}]  }
   0x1   :  { %s1958_s17 = smov 0   ;;  %s1960_s18 = smov 0  }
   0x2   :  { %s1962_s19 = smov 0   ;;  %s1964_s20 = smov 0  }
   0x3   :  { %s1966_s21 = smov 0  }
   0x4 LB: > { %s26_s22 = sadd.s32 1, %s1915_s18  ;;  %s29_s23 = sadd.s32 1, %s1919_s19  ;;  %s1927_s21 = sphi %s1966_s21, %s14_s21   ;;  %s1923_s20 = sphi %s1964_s20, %s2322_s20   ;;  %s1919_s19 = sphi %s1962_s19, %s2321_s19   ;;  %s1915_s18 = sphi %s1960_s18, %s2320_s18   ;;  %s1911_s17 = sphi %s1958_s17, %s2319_s17   ;;  %s1907_s16 = sphi %s1956_s16, %s2318_s16   ;;  %s1903_s15 = sphi %s1954_s15, %s2317_s15  }
   0x5   : > { %p27_p0 = scmp.ge.s32.totalorder %s26_s22, 2  ;;  %p1508_p1 = scmp.ge.s32.totalorder %s1927_s21, 1 }
   0x6   : > { %p248_p2 = scmp.lt.s32.totalorder %s1927_s21, 9  ;;  %s33_s24 = sadd.s32 1, %s1923_s20 }
   0x7   : > { %s2324_s22 = smov (%p27_p0, %s26_s22), 0  ;;  %s2326_s23 = smov (!%p27_p0, %s29_s23), %s1919_s19 }
   0x8   : > { %p249_p3 = pnand %p1508_p1, %p248_p2  ;;  %p31_p4 = scmp.ge.s32.totalorder %s2326_s23, 2 }
   0x9   : > { %p319_p6 = scmp.lt.s32.totalorder (!%p249_p3), %s1903_s15, 1  ;;  %p321_p7 = scmp.lt.s32.totalorder (!%p249_p3), %s1911_s17, 1  ;;  %vm544_vm0 = vcmask (!%p249_p3), 130048  }
   0xa   : > { %s2328_s23 = smov (%p31_p4, %s2326_s23), 0  ;;  %s2330_s24 = smov (!%p31_p4, %s33_s24), %s1923_s20 }
   0xb   : > { %p35_p5 = scmp.ge.s32.totalorder %s2330_s24, 2  ;;  %252 = sbr.rel (%p249_p3) target bundleno = 749 (0x2ed), region = 36 }
   0xc   : > { %s1509_s25 = sshll.u32 (!%p249_p3), %s1907_s16, 4 }
   0xd   : > { %s2332_s24 = smov (%p35_p5, %s2330_s24), 0  ;;  %p323_p8 = scmp.lt.s32.totalorder (!%p249_p3), %s1509_s25, 31 }
  0x12   : > { %s2334_s15 = smov (!%p319_p6, %s1903_s15), 1  ;;  %s2336_s17 = smov (!%p321_p7, %s1911_s17), 1 }
  0x13   : > { %s1511_s26 = sshll.u32 %s2334_s15, 6  ;;  %s1510_s27 = sshll.u32 %s2336_s17, 5 }
  0x14   : > { %s2002_s28 = sadd.s32 %s1511_s26, %s1510_s27  ;;  %s2338_s25 = smov (!%p323_p8, %s1509_s25), 31 }
  0x15   : > { %s1515_s29 = sshll.u32 %s2002_s28, 2  ;;  %s326_s7 = sadd.s32 %s1510_s27, %s2338_s25 }
  0x16   : > { %s2010_s6 = scalar_lea.vmem %s2313_s1, %s1515_s29  ;;  %s2022_s8 = sadd.s32 %s1511_s26, %s326_s7 }
  0x17   : > { %v1737_v0 = vld [vmem:[%s2010_s6 + $0x40] sm:$0xff]   ;;  %v1739_v2 = vld [vmem:[%s2010_s6 + $0x48] sm:$0xff]   ;;  %v1741_v6 = vld [vmem:[%s2010_s6 + $0x50] sm:$0xff]   ;;  %s1512_s9 = sshll.u32 %s2022_s8, 2  ;;  %s2084_s15 = scalar_lea.vmem %s2314_s2, %s1515_s29 }
  0x18   : > { %v1738_v1 = vld [vmem:[%s2010_s6] sm:$0xff]   ;;  %1673 = vmatprep.subr.msk.bf16.mxu0 %vm544_vm0, %v1737_v0  ;;  %v1740_v4 = vld [vmem:[%s2010_s6 + $0x8] sm:$0xff]   ;;  %v1742_v7 = vld [vmem:[%s2010_s6 + $0x10] sm:$0xff]   ;;  %s2032_s12 = scalar_lea.vmem %s2312_s0, %s1512_s9  ;;  %s1520_s16 = sshll.u32 %s2338_s25, 1 }
  0x19   : > { %v570_v3 = vsel %vm544_vm0, %v1738_v1, 0  ;;  %v573_v5 = vsel %vm544_vm0, %v1740_v4, 0  ;;  %v1753_v8 = vld [vmem:[%s2032_s12] sm:$0xff]   ;;  %v576_v9 = vsel %vm544_vm0, %v1742_v7, 0  ;;  %v1743_v10 = vld [vmem:[%s2010_s6 + $0x58] sm:$0xff]   ;;  %v1747_v16 = vld [vmem:[%s2010_s6 + $0x68] sm:$0xff]  }
  0x1a   : > { %1578 = vmatpush3.bf16.xpose.msra.mxu0 %v570_v3  ;;  %1593 = vmatprep.mubr.msk.bf16.mxu0 %vm544_vm0, %v1753_v8  ;;  %v1744_v11 = vld [vmem:[%s2010_s6 + $0x18] sm:$0xff]   ;;  %v1745_v13 = vld [vmem:[%s2010_s6 + $0x60] sm:$0xff]   ;;  %v1748_v17 = vld [vmem:[%s2010_s6 + $0x28] sm:$0xff]   ;;  %s1521_s26 = sshll.u32 %s2336_s17, 6  ;;  %s1526_s17 = sshll.u32 %s2022_s8, 3 }
  0x1b   : > { %1674 = vmatprep.subr.msk.bf16.mxu0 %vm544_vm0, %v1739_v2  ;;  %v579_v12 = vsel %vm544_vm0, %v1744_v11, 0  ;;  %v1746_v14 = vld [vmem:[%s2010_s6 + $0x20] sm:$0xff]   ;;  %v585_v18 = vsel %vm544_vm0, %v1748_v17, 0  ;;  %v1749_v19 = vld [vmem:[%s2010_s6 + $0x70] sm:$0xff]   ;;  %v1751_v22 = vld [vmem:[%s2010_s6 + $0x78] sm:$0xff]   ;;  %s357_s27 = sadd.s32 %s1521_s26, %s1520_s16  ;;  %s2257_s7 = scalar_lea.vmem %s2316_s4, %s1526_s17 }
  0x1c   : > { %v582_v15 = vsel %vm544_vm0, %v1746_v14, 0  ;;  %v1750_v20 = vld [vmem:[%s2010_s6 + $0x30] sm:$0xff]   ;;  %v1752_v23 = vld [vmem:[%s2010_s6 + $0x38] sm:$0xff]   ;;  %v1754_v25 = vld [vmem:[%s2032_s12 + $0x8] sm:$0xff]   ;;  %s1522_s28 = sshll.u32 %s357_s27, 2 }
  0x1d   : > { %v588_v21 = vsel %vm544_vm0, %v1750_v20, 0  ;;  %v591_v24 = vsel %vm544_vm0, %v1752_v23, 0  ;;  %v1755_v26 = vld [vmem:[%s2032_s12 + $0x10] sm:$0xff]   ;;  %v1756_v27 = vld [vmem:[%s2032_s12 + $0x18] sm:$0xff]   ;;  %v1757_v28 = vld [vmem:[%s2032_s12 + $0x20] sm:$0xff]   ;;  %s2097_s5 = scalar_lea.vmem %s2315_s3, %s1522_s28 }
  0x1e   : > { %v1758_v29 = vld [vmem:[%s2032_s12 + $0x28] sm:$0xff]   ;;  %v1759_v30 = vld [vmem:[%s2032_s12 + $0x30] sm:$0xff]   ;;  %v1760_v31 = vld [vmem:[%s2032_s12 + $0x38] sm:$0xff]  }
  0x1f   : > { %v1761_v32 = vld [vmem:[%s2084_s15 + $0x40] sm:$0xff]   ;;  %v1763_v34 = vld [vmem:[%s2084_s15 + $0x48] sm:$0xff]   ;;  %v1765_v36 = vld [vmem:[%s2084_s15 + $0x50] sm:$0xff]  }
  0x20   : > { %v1762_v33 = vld [vmem:[%s2084_s15] sm:$0xff]   ;;  %1609 = vmatprep.subr.bf16.mxu1 %v1761_v32  ;;  %v1764_v35 = vld [vmem:[%s2084_s15 + $0x8] sm:$0xff]   ;;  %v1766_v37 = vld [vmem:[%s2084_s15 + $0x10] sm:$0xff]  }
  0x21   : > { %1610 = vmatpush3.bf16.msra.mxu1 %v1762_v33  ;;  %v762_v38 = vld [vmem:[%s2097_s5] sm:$0xff]  ;;  %v763_v39 = vld [vmem:[%s2097_s5 + $0x8] sm:$0xff]  ;;  %v764_v54 = vld [vmem:[%s2097_s5 + $0x10] sm:$0xff] }
  0x22   : > { %1580 = vmatpush3.bf16.xpose.msra.mxu0 %v573_v5  ;;  %1611 = vmatprep.subr.bf16.mxu1 %v1763_v34  ;;  %v778_v40 = vunpack.c.l.bf16 %v762_v38  ;;  %v779_v42 = vunpack.c.h.bf16 %v762_v38  ;;  %v780_v47 = vunpack.c.l.bf16 %v763_v39  ;;  %v781_v48 = vunpack.c.h.bf16 %v763_v39  ;;  %v765_v58 = vld [vmem:[%s2097_s5 + $0x18] sm:$0xff]  ;;  %v767_v14 = vld [vmem:[%s2097_s5 + $0x28] sm:$0xff] }
  0x23   : > { %1675 = vmatprep.subr.msk.bf16.mxu0 %vm544_vm0, %v1741_v6  ;;  %v782_v59 = vunpack.c.l.bf16 %v764_v54  ;;  %v783_v61 = vunpack.c.h.bf16 %v764_v54  ;;  %v784_v2 = vunpack.c.l.bf16 %v765_v58  ;;  %v785_v3 = vunpack.c.h.bf16 %v765_v58  ;;  %v769_v34 = vld [vmem:[%s2097_s5 + $0x38] sm:$0xff]  ;;  %v1770_v58 = vld [vmem:[%s2084_s15 + $0x20] sm:$0xff]  }
  0x24   : > { %v788_v20 = vunpack.c.l.bf16 %v767_v14  ;;  %v789_v23 = vunpack.c.h.bf16 %v767_v14 }
  0x25   : > { %1612 = vmatpush3.bf16.msra.mxu1 %v1764_v35 }
  0x26   : > { %1613 = vmatprep.subr.bf16.mxu1 %v1765_v36  ;;  %v1767_v36 = vld [vmem:[%s2084_s15 + $0x58] sm:$0xff]  }
  0x29   : > { %1614 = vmatpush3.bf16.msra.mxu1 %v1766_v37 }
  0x2a   : > { %1582 = vmatpush3.bf16.xpose.msra.mxu0 %v576_v9  ;;  %1615 = vmatprep.subr.bf16.mxu1 %v1767_v36  ;;  %v1776_v36 = vld [vmem:[%s2084_s15 + $0x38] sm:$0xff]  }
  0x2b   : > { %1676 = vmatprep.subr.msk.bf16.mxu0 %vm544_vm0, %v1743_v10  ;;  %v766_v10 = vld [vmem:[%s2097_s5 + $0x20] sm:$0xff] }
  0x2c   : > { %v787_v17 = vunpack.c.h.bf16 %v766_v10 }
  0x32   : > { %1584 = vmatpush3.bf16.xpose.msra.mxu0 %v579_v12 }
  0x33   : > { %1677 = vmatprep.subr.msk.bf16.mxu0 %vm544_vm0, %v1745_v13 }
  0x3a   : > { %1586 = vmatpush3.bf16.xpose.msra.mxu0 %v582_v15  ;;  %v786_v15 = vunpack.c.l.bf16 %v766_v10 }
  0x3b   : > { %1678 = vmatprep.subr.msk.bf16.mxu0 %vm544_vm0, %v1747_v16 }
  0x42   : > { %1588 = vmatpush3.bf16.xpose.msra.mxu0 %v585_v18 }
  0x43   : > { %1679 = vmatprep.subr.msk.bf16.mxu0 %vm544_vm0, %v1749_v19 }
  0x4a   : > { %1590 = vmatpush3.bf16.xpose.msra.mxu0 %v588_v21 }
  0x4b   : > { %1680 = vmatprep.subr.msk.bf16.mxu0 %vm544_vm0, %v1751_v22 }
  0x52   : > { %1592 = vmatpush3.bf16.xpose.msra.mxu0 %v591_v24 }
  0x59   : > { %1594 = vmatmul.mubr.msk.bf16.vlgmr.msra.gmra.mrb[0].mxu0 %vm544_vm0, %v1753_v8 }
  0x5a   : > { %1595 = vmatprep.mubr.msk.bf16.mxu0 %vm544_vm0, %v1754_v25 }
  0x61   : > { %1596 = vmatmul.mubr.msk.bf16.gmra.mrb[4].mxu0 %vm544_vm0, %v1754_v25 }
  0x62   : > { %1597 = vmatprep.mubr.msk.bf16.mxu0 %vm544_vm0, %v1755_v26 }
  0x69   : > { %1598 = vmatmul.mubr.msk.bf16.gmra.mrb[8].mxu0 %vm544_vm0, %v1755_v26 }
  0x6a   : > { %1599 = vmatprep.mubr.msk.bf16.mxu0 %vm544_vm0, %v1756_v27 }
  0x71   : > { %1600 = vmatmul.mubr.msk.bf16.gmra.mrb[12].mxu0 %vm544_vm0, %v1756_v27 }
  0x72   : > { %1601 = vmatprep.mubr.msk.bf16.mxu0 %vm544_vm0, %v1757_v28 }
  0x79   : > { %1602 = vmatmul.mubr.msk.bf16.gmra.mrb[16].mxu0 %vm544_vm0, %v1757_v28 }
  0x7a   : > { %1603 = vmatprep.mubr.msk.bf16.mxu0 %vm544_vm0, %v1758_v29 }
  0x81   : > { %1604 = vmatmul.mubr.msk.bf16.gmra.mrb[20].mxu0 %vm544_vm0, %v1758_v29 }
  0x82   : > { %1605 = vmatprep.mubr.msk.bf16.mxu0 %vm544_vm0, %v1759_v30 }
  0x89   : > { %1606 = vmatmul.mubr.msk.bf16.gmra.mrb[24].mxu0 %vm544_vm0, %v1759_v30  ;;  %v768_v30 = vld [vmem:[%s2097_s5 + $0x30] sm:$0xff] }
  0x8a   : > { %1607 = vmatprep.mubr.msk.bf16.mxu0 %vm544_vm0, %v1760_v31  ;;  %v790_v35 = vunpack.c.l.bf16 %v768_v30  ;;  %v791_v38 = vunpack.c.h.bf16 %v768_v30  ;;  %v1775_v30 = vld [vmem:[%s2084_s15 + $0x78] sm:$0xff]  }
  0x91   : > { %1608 = vmatmul.mubr.msk.bf16.gmra.mrb[28].mxu0 %vm544_vm0, %v1760_v31 }
 0x12c   : > { %v651_v41 = vpop.f32.mrb[0].mxu0 }
 0x12d   : > { %v730_v43 = vmul.f32 0.25, %v651_v41  ;;  %v653_v44 = vpop.f32.mrb[1].mxu0 }
 0x12e   : > { %v731_v45 = vmul.f32 0.25, %v653_v44  ;;  %v655_v46 = vpop.f32.mrb[2].mxu0 }
 0x12f   : > { %v732_v49 = vmul.f32 0.25, %v655_v46  ;;  %v657_v50 = vpop.f32.mrb[3].mxu0  ;;  %v2101_v51 = vadd.f32 %v778_v40, %v730_v43  ;;  %v1768_v40 = vld [vmem:[%s2084_s15 + $0x18] sm:$0xff]   ;;  %v792_v43 = vunpack.c.l.bf16 %v769_v34  ;;  %v793_v46 = vunpack.c.h.bf16 %v769_v34 }
 0x130   : > { %v733_v52 = vmul.f32 0.25, %v657_v50  ;;  %v2103_v53 = vadd.f32 %v779_v42, %v731_v45  ;;  %1616 = vmatpush3.bf16.msra.mxu1 %v1768_v40  ;;  %v1769_v50 = vld [vmem:[%s2084_s15 + $0x60] sm:$0xff]  }
 0x131   : > { %v2106_v55 = vadd.f32 %v780_v47, %v732_v49  ;;  %1617 = vmatprep.subr.bf16.mxu1 %v1769_v50 }
 0x132   : > { %v2108_v56 = vadd.f32 %v781_v48, %v733_v52  ;;  %v842_v57 = vmax.f32 %v2101_v51, %v2103_v53 }
 0x134   : > { %843 = vmax.xlane.f32.xlu0 %v842_v57  ;;  %v661_v60 = vpop.f32.mrb[4].mxu0  ;;  %v845_v4 = vmax.f32 %v2106_v55, %v2108_v56  ;;  %v770_v57 = vld [vmem:[%s2097_s5 + $0x40] sm:$0xff]  ;;  %1618 = vmatpush3.bf16.msra.mxu1 %v1770_v58  ;;  %v775_v58 = vld [vmem:[%s2097_s5 + $0x68] sm:$0xff] }
 0x135   : > { %v734_v62 = vmul.f32 0.25, %v661_v60  ;;  %v663_v63 = vpop.f32.mrb[5].mxu0 }
 0x136   : > { %v735_v0 = vmul.f32 0.25, %v663_v63  ;;  %v665_v1 = vpop.f32.mrb[6].mxu0  ;;  %v794_v63 = vunpack.c.l.bf16 %v770_v57 }
 0x137   : > { %v736_v5 = vmul.f32 0.25, %v665_v1  ;;  %v667_v6 = vpop.f32.mrb[7].mxu0  ;;  %v2115_v7 = vadd.f32 %v782_v59, %v734_v62  ;;  %v771_v62 = vld [vmem:[%s2097_s5 + $0x48] sm:$0xff] }
 0x138   : > { %v737_v8 = vmul.f32 0.25, %v667_v6  ;;  %846 = vmax.xlane.f32.xlu0 %v845_v4  ;;  %v2117_v9 = vadd.f32 %v783_v61, %v735_v0  ;;  %v1771_v0 = vld [vmem:[%s2084_s15 + $0x68] sm:$0xff]   ;;  %v797_v14 = vunpack.c.h.bf16 %v771_v62 }
 0x139   : > { %v2120_v11 = vadd.f32 %v784_v2, %v736_v5  ;;  %v795_v2 = vunpack.c.h.bf16 %v770_v57  ;;  %v1772_v4 = vld [vmem:[%s2084_s15 + $0x28] sm:$0xff]   ;;  %1619 = vmatprep.subr.bf16.mxu1 %v1771_v0 }
 0x13a   : > { %v2122_v12 = vadd.f32 %v785_v3, %v737_v8  ;;  %v848_v13 = vmax.f32 %v2115_v7, %v2117_v9  ;;  %v796_v8 = vunpack.c.l.bf16 %v771_v62  ;;  %1620 = vmatpush3.bf16.msra.mxu1 %v1772_v4 }
 0x13c   : > { %849 = vmax.xlane.f32.xlu1 %v848_v13  ;;  %v671_v16 = vpop.f32.mrb[8].mxu0  ;;  %v851_v24 = vmax.f32 %v2120_v11, %v2122_v12 }
 0x13d   : > { %v738_v18 = vmul.f32 0.25, %v671_v16  ;;  %v673_v19 = vpop.f32.mrb[9].mxu0 }
 0x13e   : > { %v739_v21 = vmul.f32 0.25, %v673_v19  ;;  %v675_v22 = vpop.f32.mrb[10].mxu0 }
 0x13f   : > { %v2129_v25 = vadd.f32 %v786_v15, %v738_v18  ;;  %v740_v26 = vmul.f32 0.25, %v675_v22  ;;  %v677_v27 = vpop.f32.mrb[11].mxu0  ;;  %v1773_v18 = vld [vmem:[%s2084_s15 + $0x70] sm:$0xff]  }
 0x140   : > { %v2131_v28 = vadd.f32 %v787_v17, %v739_v21  ;;  %v741_v29 = vmul.f32 0.25, %v677_v27  ;;  %852 = vmax.xlane.f32.xlu1 %v851_v24  ;;  %v772_v21 = vld [vmem:[%s2097_s5 + $0x50] sm:$0xff]  ;;  %1621 = vmatprep.subr.bf16.mxu1 %v1773_v18  ;;  %v773_v27 = vld [vmem:[%s2097_s5 + $0x58] sm:$0xff] }
 0x141   : > { %v2134_v31 = vadd.f32 %v788_v20, %v740_v26  ;;  %v1774_v22 = vld [vmem:[%s2084_s15 + $0x30] sm:$0xff]   ;;  %v799_v34 = vunpack.c.h.bf16 %v772_v21 }
 0x142   : > { %v2136_v32 = vadd.f32 %v789_v23, %v741_v29  ;;  %v854_v33 = vmax.f32 %v2129_v25, %v2131_v28  ;;  %1622 = vmatpush3.bf16.msra.mxu1 %v1774_v22  ;;  %v798_v29 = vunpack.c.l.bf16 %v772_v21  ;;  %v777_v22 = vld [vmem:[%s2097_s5 + $0x78] sm:$0xff] }
 0x143   : > { %1623 = vmatprep.subr.bf16.mxu1 %v1775_v30 }
 0x144   : > { %855 = vmax.xlane.f32.xlu0 %v854_v33  ;;  %v681_v37 = vpop.f32.mrb[12].mxu0  ;;  %v857_v39 = vmax.f32 %v2134_v31, %v2136_v32 }
 0x145   : > { %v742_v41 = vmul.f32 0.25, %v681_v37  ;;  %v683_v42 = vpop.f32.mrb[13].mxu0 }
 0x146   : > { %v743_v44 = vmul.f32 0.25, %v683_v42  ;;  %858 = vmax.xlane.f32.xlu1 %v857_v39  ;;  %v685_v45 = vpop.f32.mrb[14].mxu0  ;;  %v800_v39 = vunpack.c.l.bf16 %v773_v27  ;;  %v801_v42 = vunpack.c.h.bf16 %v773_v27  ;;  %1624 = vmatpush3.bf16.msra.mxu1 %v1776_v36 }
 0x147   : > { %v2145_v47 = vadd.f32 %v790_v35, %v742_v41  ;;  %v744_v48 = vmul.f32 0.25, %v685_v45  ;;  %v687_v49 = vpop.f32.mrb[15].mxu0 }
 0x148   : > { %v2148_v52 = vadd.f32 %v791_v38, %v743_v44  ;;  %v745_v54 = vmul.f32 0.25, %v687_v49  ;;  %v774_v49 = vld [vmem:[%s2097_s5 + $0x60] sm:$0xff] }
 0x149   : > { %v2152_v59 = vadd.f32 %v792_v43, %v744_v48 }
 0x14a   : > { %v2154_v60 = vadd.f32 %v793_v46, %v745_v54  ;;  %v860_v61 = vmax.f32 %v2145_v47, %v2148_v52 }
 0x14c   : > { %861 = vmax.xlane.f32.xlu0 %v860_v61  ;;  %v691_v1 = vpop.f32.mrb[16].mxu0  ;;  %v863_v3 = vmax.f32 %v2152_v59, %v2154_v60  ;;  %v802_v61 = vunpack.c.l.bf16 %v774_v49 }
 0x14d   : > { %v746_v5 = vmul.f32 0.25, %v691_v1  ;;  %v693_v6 = vpop.f32.mrb[17].mxu0 }
 0x14e   : > { %v747_v10 = vmul.f32 0.25, %v693_v6  ;;  %864 = vmax.xlane.f32.xlu1 %v863_v3  ;;  %v695_v13 = vpop.f32.mrb[18].mxu0  ;;  %v804_v3 = vunpack.c.l.bf16 %v775_v58  ;;  %v805_v6 = vunpack.c.h.bf16 %v775_v58 }
 0x14f   : > { %v2163_v15 = vadd.f32 %v794_v63, %v746_v5  ;;  %v748_v16 = vmul.f32 0.25, %v695_v13  ;;  %v697_v17 = vpop.f32.mrb[19].mxu0  ;;  %v803_v63 = vunpack.c.h.bf16 %v774_v49 }
 0x150   : > { %v2166_v19 = vadd.f32 %v795_v2, %v747_v10  ;;  %v749_v20 = vmul.f32 0.25, %v697_v17  ;;  %v776_v17 = vld [vmem:[%s2097_s5 + $0x70] sm:$0xff] }
 0x151   : > { %v2170_v23 = vadd.f32 %v796_v8, %v748_v16 }
 0x152   : > { %v2172_v24 = vadd.f32 %v797_v14, %v749_v20  ;;  %v866_v26 = vmax.f32 %v2163_v15, %v2166_v19 }
 0x154   : > { %867 = vmax.xlane.f32.xlu0 %v866_v26  ;;  %v701_v33 = vpop.f32.mrb[20].mxu0  ;;  %v869_v35 = vmax.f32 %v2170_v23, %v2172_v24  ;;  %v806_v26 = vunpack.c.l.bf16 %v776_v17 }
 0x155   : > { %v750_v37 = vmul.f32 0.25, %v701_v33  ;;  %v703_v38 = vpop.f32.mrb[21].mxu0 }
 0x156   : > { %v751_v40 = vmul.f32 0.25, %v703_v38  ;;  %870 = vmax.xlane.f32.xlu1 %v869_v35  ;;  %v705_v41 = vpop.f32.mrb[22].mxu0  ;;  %v808_v35 = vunpack.c.l.bf16 %v777_v22  ;;  %v809_v38 = vunpack.c.h.bf16 %v777_v22 }
 0x157   : > { %v2181_v43 = vadd.f32 %v798_v29, %v750_v37  ;;  %v752_v44 = vmul.f32 0.25, %v705_v41  ;;  %v707_v45 = vpop.f32.mrb[23].mxu0  ;;  %v807_v29 = vunpack.c.h.bf16 %v776_v17 }
 0x158   : > { %v2183_v46 = vadd.f32 %v799_v34, %v751_v40  ;;  %v753_v48 = vmul.f32 0.25, %v707_v45 }
 0x159   : > { %v2186_v50 = vadd.f32 %v800_v39, %v752_v44 }
 0x15a   : > { %v2188_v54 = vadd.f32 %v801_v42, %v753_v48  ;;  %v872_v57 = vmax.f32 %v2181_v43, %v2183_v46 }
 0x15c   : > { %873 = vmax.xlane.f32.xlu0 %v872_v57  ;;  %v711_v62 = vpop.f32.mrb[24].mxu0  ;;  %v875_v0 = vmax.f32 %v2186_v50, %v2188_v54 }
 0x15d   : > { %v754_v1 = vmul.f32 0.25, %v711_v62  ;;  %v713_v2 = vpop.f32.mrb[25].mxu0 }
 0x15e   : > { %v755_v4 = vmul.f32 0.25, %v713_v2  ;;  %876 = vmax.xlane.f32.xlu1 %v875_v0  ;;  %v715_v5 = vpop.f32.mrb[26].mxu0 }
 0x15f   : > { %v2195_v8 = vadd.f32 %v802_v61, %v754_v1  ;;  %v756_v10 = vmul.f32 0.25, %v715_v5  ;;  %v717_v13 = vpop.f32.mrb[27].mxu0 }
 0x160   : > { %v2197_v14 = vadd.f32 %v803_v63, %v755_v4  ;;  %v757_v16 = vmul.f32 0.25, %v717_v13 }
 0x161   : > { %v2200_v18 = vadd.f32 %v804_v3, %v756_v10 }
 0x162   : > { %v2202_v20 = vadd.f32 %v805_v6, %v757_v16  ;;  %v878_v21 = vmax.f32 %v2195_v8, %v2197_v14 }
 0x164   : > { %879 = vmax.xlane.f32.xlu0 %v878_v21  ;;  %v721_v27 = vpop.f32.mrb[28].mxu0  ;;  %v881_v30 = vmax.f32 %v2200_v18, %v2202_v20 }
 0x165   : > { %v758_v33 = vmul.f32 0.25, %v721_v27  ;;  %v723_v34 = vpop.f32.mrb[29].mxu0 }
 0x166   : > { %v759_v36 = vmul.f32 0.25, %v723_v34  ;;  %882 = vmax.xlane.f32.xlu1 %v881_v30  ;;  %v725_v37 = vpop.f32.mrb[30].mxu0 }
 0x167   : > { %v2209_v39 = vadd.f32 %v806_v26, %v758_v33  ;;  %v760_v40 = vmul.f32 0.25, %v725_v37  ;;  %v727_v41 = vpop.f32.mrb[31].mxu0 }
 0x168   : > { %v2211_v42 = vadd.f32 %v807_v29, %v759_v36  ;;  %v761_v44 = vmul.f32 0.25, %v727_v41 }
 0x169   : > { %v2213_v45 = vadd.f32 %v808_v35, %v760_v40 }
 0x16a   : > { %v2215_v48 = vadd.f32 %v809_v38, %v761_v44  ;;  %v884_v49 = vmax.f32 %v2209_v39, %v2211_v42 }
 0x16c   : > { %885 = vmax.xlane.f32.xlu0 %v884_v49  ;;  %v887_v57 = vmax.f32 %v2213_v45, %v2215_v48 }
 0x16e   : > { %888 = vmax.xlane.f32.xlu1 %v887_v57 }
 0x1c1   : > { %v844_v58 = vpop.xlane.xlu0 %843 }
 0x1c2   : > { %v890_v61 = vsub.f32 %v2101_v51, %v844_v58  ;;  %v891_v62 = vsub.f32 %v2103_v53, %v844_v58 }
 0x1c4   : > { %v922_v63 = vmul.f32 1.442695, %v890_v61  ;;  %v924_v0 = vmul.f32 1.442695, %v891_v62 }
 0x1c5   : > { %v847_v1 = vpop.xlane.xlu0 %846 }
 0x1c6   : > { %1777 = vpow2.f32 %v922_v63  ;;  %v892_v2 = vsub.f32 %v2106_v55, %v847_v1  ;;  %v893_v3 = vsub.f32 %v2108_v56, %v847_v1 }
 0x1c7   : > { %1779 = vpow2.f32 %v924_v0 }
 0x1c8   : > { %v926_v4 = vmul.f32 1.442695, %v892_v2  ;;  %v928_v5 = vmul.f32 1.442695, %v893_v3 }
 0x1c9   : > { %v850_v6 = vpop.xlane.xlu1 %849 }
 0x1ca   : > { %1781 = vpow2.f32 %v926_v4  ;;  %v894_v10 = vsub.f32 %v2115_v7, %v850_v6  ;;  %v895_v13 = vsub.f32 %v2117_v9, %v850_v6 }
 0x1cb   : > { %1783 = vpow2.f32 %v928_v5 }
 0x1cc   : > { %v930_v51 = vmul.f32 1.442695, %v894_v10  ;;  %v932_v53 = vmul.f32 1.442695, %v895_v13 }
 0x1cd   : > { %v853_v16 = vpop.xlane.xlu1 %852 }
 0x1ce   : > { %1785 = vpow2.f32 %v930_v51  ;;  %v896_v17 = vsub.f32 %v2120_v11, %v853_v16  ;;  %v897_v55 = vsub.f32 %v2122_v12, %v853_v16 }
 0x1cf   : > { %1787 = vpow2.f32 %v932_v53 }
 0x1d0   : > { %v1778_v56 = vpop.eup %1777  ;;  %v934_v21 = vmul.f32 1.442695, %v896_v17  ;;  %v936_v22 = vmul.f32 1.442695, %v897_v55 }
 0x1d1   : > { %v1780_v26 = vpop.eup %1779  ;;  %v856_v27 = vpop.xlane.xlu0 %855 }
 0x1d2   : > { %1789 = vpow2.f32 %v934_v21  ;;  %v898_v7 = vsub.f32 %v2129_v25, %v856_v27  ;;  %v899_v9 = vsub.f32 %v2131_v28, %v856_v27  ;;  %v986_v29 = vadd.f32 %v1780_v26, %v1778_v56 }
 0x1d3   : > { %1791 = vpow2.f32 %v936_v22  ;;  %v859_v30 = vpop.xlane.xlu1 %858 }
 0x1d4   : > { %v1782_v33 = vpop.eup %1781  ;;  %v938_v34 = vmul.f32 1.442695, %v898_v7  ;;  %v940_v35 = vmul.f32 1.442695, %v899_v9  ;;  %v900_v11 = vsub.f32 %v2134_v31, %v859_v30  ;;  %v901_v12 = vsub.f32 %v2136_v32, %v859_v30  ;;  %987 = vadd.xlane.f32.xlu0 %v986_v29 }
 0x1d5   : > { %v1784_v36 = vpop.eup %1783  ;;  %v1034_v37 = vpack.c.bf16 %v1782_v33, %v1778_v56 }
 0x1d6   : > { %1793 = vpow2.f32 %v938_v34  ;;  %v942_v38 = vmul.f32 1.442695, %v900_v11  ;;  %v944_v40 = vmul.f32 1.442695, %v901_v12  ;;  %v1035_v41 = vpack.c.bf16 %v1784_v36, %v1780_v26 }
 0x1d7   : > { %1795 = vpow2.f32 %v940_v35  ;;  %v989_v25 = vadd.f32 %v1784_v36, %v1782_v33 }
 0x1d8   : > { %v1786_v28 = vpop.eup %1785  ;;  %1797 = vpow2.f32 %v942_v38  ;;  %1210 = vmatprep.mubr.bf16.mxu1 %v1035_v41 }
 0x1d9   : > { %v1788_v44 = vpop.eup %1787  ;;  %1799 = vpow2.f32 %v944_v40  ;;  %990 = vadd.xlane.f32.xlu1 %v989_v25  ;;  %1211 = vmatmul.mubr.bf16.vlgmr.msra.gmra.mrb[0].mxu1 %v1034_v37  ;;  %v862_v49 = vpop.xlane.xlu0 %861 }
 0x1da   : > { %v902_v31 = vsub.f32 %v2145_v47, %v862_v49  ;;  %v903_v32 = vsub.f32 %v2148_v52, %v862_v49  ;;  %v992_v57 = vadd.f32 %v1788_v44, %v1786_v28 }
 0x1db   : > { %v865_v58 = vpop.xlane.xlu1 %864 }
 0x1dc   : > { %v1790_v61 = vpop.eup %1789  ;;  %v946_v62 = vmul.f32 1.442695, %v902_v31  ;;  %v948_v63 = vmul.f32 1.442695, %v903_v32  ;;  %v904_v0 = vsub.f32 %v2152_v59, %v865_v58  ;;  %v905_v1 = vsub.f32 %v2154_v60, %v865_v58  ;;  %993 = vadd.xlane.f32.xlu0 %v992_v57 }
 0x1dd   : > { %v1792_v2 = vpop.eup %1791  ;;  %v1036_v3 = vpack.c.bf16 %v1790_v61, %v1786_v28 }
 0x1de   : > { %1801 = vpow2.f32 %v946_v62  ;;  %v950_v4 = vmul.f32 1.442695, %v904_v0  ;;  %v952_v5 = vmul.f32 1.442695, %v905_v1  ;;  %v1037_v6 = vpack.c.bf16 %v1792_v2, %v1788_v44 }
 0x1df   : > { %1803 = vpow2.f32 %v948_v63  ;;  %v995_v47 = vadd.f32 %v1792_v2, %v1790_v61 }
 0x1e0   : > { %v1794_v10 = vpop.eup %1793  ;;  %1805 = vpow2.f32 %v950_v4  ;;  %1218 = vmatprep.mubr.bf16.mxu1 %v1037_v6 }
 0x1e1   : > { %v1796_v52 = vpop.eup %1795  ;;  %1807 = vpow2.f32 %v952_v5  ;;  %996 = vadd.xlane.f32.xlu1 %v995_v47  ;;  %1219 = vmatmul.mubr.bf16.gmra.mrb[4].mxu1 %v1036_v3  ;;  %v868_v13 = vpop.xlane.xlu0 %867 }
 0x1e2   : > { %v1798_v59 = vpop.eup %1797  ;;  %v906_v60 = vsub.f32 %v2163_v15, %v868_v13  ;;  %v907_v51 = vsub.f32 %v2166_v19, %v868_v13  ;;  %v998_v53 = vadd.f32 %v1796_v52, %v1794_v10 }
 0x1e3   : > { %v1800_v16 = vpop.eup %1799  ;;  %v871_v17 = vpop.xlane.xlu1 %870  ;;  %v1038_v15 = vpack.c.bf16 %v1798_v59, %v1794_v10 }
 0x1e4   : > { %v954_v55 = vmul.f32 1.442695, %v906_v60  ;;  %v956_v56 = vmul.f32 1.442695, %v907_v51  ;;  %v908_v21 = vsub.f32 %v2170_v23, %v871_v17  ;;  %v909_v22 = vsub.f32 %v2172_v24, %v871_v17  ;;  %999 = vadd.xlane.f32.xlu0 %v998_v53 }
 0x1e5   : > { %v1039_v26 = vpack.c.bf16 %v1800_v16, %v1796_v52  ;;  %v1001_v27 = vadd.f32 %v1800_v16, %v1798_v59 }
 0x1e6   : > { %1809 = vpow2.f32 %v954_v55  ;;  %v958_v7 = vmul.f32 1.442695, %v908_v21  ;;  %v960_v9 = vmul.f32 1.442695, %v909_v22 }
 0x1e7   : > { %1811 = vpow2.f32 %v956_v56  ;;  %1226 = vmatprep.mubr.bf16.mxu1 %v1039_v26  ;;  %1002 = vadd.xlane.f32.xlu1 %v1001_v27 }
 0x1e8   : > { %v1802_v19 = vpop.eup %1801  ;;  %1813 = vpow2.f32 %v958_v7 }
 0x1e9   : > { %v1804_v29 = vpop.eup %1803  ;;  %1815 = vpow2.f32 %v960_v9  ;;  %1227 = vmatmul.mubr.bf16.gmra.mrb[8].mxu1 %v1038_v15  ;;  %v874_v30 = vpop.xlane.xlu0 %873 }
 0x1ea   : > { %v1806_v33 = vpop.eup %1805  ;;  %v910_v23 = vsub.f32 %v2181_v43, %v874_v30  ;;  %v911_v24 = vsub.f32 %v2183_v46, %v874_v30  ;;  %v1004_v34 = vadd.f32 %v1804_v29, %v1802_v19 }
 0x1eb   : > { %v1808_v35 = vpop.eup %1807  ;;  %v877_v11 = vpop.xlane.xlu1 %876  ;;  %v1040_v43 = vpack.c.bf16 %v1806_v33, %v1802_v19 }
 0x1ec   : > { %v962_v12 = vmul.f32 1.442695, %v910_v23  ;;  %v964_v36 = vmul.f32 1.442695, %v911_v24  ;;  %v912_v37 = vsub.f32 %v2186_v50, %v877_v11  ;;  %v913_v38 = vsub.f32 %v2188_v54, %v877_v11  ;;  %1005 = vadd.xlane.f32.xlu0 %v1004_v34 }
 0x1ed   : > { %v1041_v40 = vpack.c.bf16 %v1808_v35, %v1804_v29  ;;  %v1007_v41 = vadd.f32 %v1808_v35, %v1806_v33 }
 0x1ee   : > { %1817 = vpow2.f32 %v962_v12  ;;  %v966_v25 = vmul.f32 1.442695, %v912_v37  ;;  %v968_v28 = vmul.f32 1.442695, %v913_v38 }
 0x1ef   : > { %1819 = vpow2.f32 %v964_v36  ;;  %1234 = vmatprep.mubr.bf16.mxu1 %v1041_v40  ;;  %1008 = vadd.xlane.f32.xlu1 %v1007_v41 }
 0x1f0   : > { %v1810_v46 = vpop.eup %1809  ;;  %1821 = vpow2.f32 %v966_v25 }
 0x1f1   : > { %v1812_v44 = vpop.eup %1811  ;;  %1823 = vpow2.f32 %v968_v28  ;;  %1235 = vmatmul.mubr.bf16.gmra.mrb[12].mxu1 %v1040_v43  ;;  %v880_v49 = vpop.xlane.xlu0 %879 }
 0x1f2   : > { %v1814_v31 = vpop.eup %1813  ;;  %v914_v50 = vsub.f32 %v2195_v8, %v880_v49  ;;  %v915_v54 = vsub.f32 %v2197_v14, %v880_v49  ;;  %v1010_v32 = vadd.f32 %v1812_v44, %v1810_v46 }
 0x1f3   : > { %v1816_v57 = vpop.eup %1815  ;;  %v883_v58 = vpop.xlane.xlu1 %882  ;;  %v1042_v8 = vpack.c.bf16 %v1814_v31, %v1810_v46 }
 0x1f4   : > { %v970_v61 = vmul.f32 1.442695, %v914_v50  ;;  %v972_v62 = vmul.f32 1.442695, %v915_v54  ;;  %v916_v63 = vsub.f32 %v2200_v18, %v883_v58  ;;  %v917_v0 = vsub.f32 %v2202_v20, %v883_v58  ;;  %1011 = vadd.xlane.f32.xlu0 %v1010_v32 }
 0x1f5   : > { %v1043_v1 = vpack.c.bf16 %v1816_v57, %v1812_v44  ;;  %v1013_v2 = vadd.f32 %v1816_v57, %v1814_v31 }
 0x1f6   : > { %1825 = vpow2.f32 %v970_v61  ;;  %v974_v3 = vmul.f32 1.442695, %v916_v63  ;;  %v976_v4 = vmul.f32 1.442695, %v917_v0 }
 0x1f7   : > { %1827 = vpow2.f32 %v972_v62  ;;  %1242 = vmatprep.mubr.bf16.mxu1 %v1043_v1  ;;  %1014 = vadd.xlane.f32.xlu1 %v1013_v2 }
 0x1f8   : > { %v1818_v14 = vpop.eup %1817  ;;  %1829 = vpow2.f32 %v974_v3 }
 0x1f9   : > { %v1820_v5 = vpop.eup %1819  ;;  %1831 = vpow2.f32 %v976_v4  ;;  %1243 = vmatmul.mubr.bf16.gmra.mrb[16].mxu1 %v1042_v8  ;;  %v886_v6 = vpop.xlane.xlu0 %885 }
 0x1fa   : > { %v1822_v47 = vpop.eup %1821  ;;  %v918_v18 = vsub.f32 %v2209_v39, %v886_v6  ;;  %v919_v20 = vsub.f32 %v2211_v42, %v886_v6  ;;  %v1016_v10 = vadd.f32 %v1820_v5, %v1818_v14 }
 0x1fb   : > { %v1824_v52 = vpop.eup %1823  ;;  %v889_v13 = vpop.xlane.xlu1 %888  ;;  %v1044_v39 = vpack.c.bf16 %v1822_v47, %v1818_v14 }
 0x1fc   : > { %v978_v59 = vmul.f32 1.442695, %v918_v18  ;;  %v980_v60 = vmul.f32 1.442695, %v919_v20  ;;  %1017 = vadd.xlane.f32.xlu0 %v1016_v10  ;;  %v920_v51 = vsub.f32 %v2213_v45, %v889_v13  ;;  %v921_v53 = vsub.f32 %v2215_v48, %v889_v13 }
 0x1fd   : > { %v1045_v16 = vpack.c.bf16 %v1824_v52, %v1820_v5  ;;  %v1019_v17 = vadd.f32 %v1824_v52, %v1822_v47 }
 0x1fe   : > { %1833 = vpow2.f32 %v978_v59  ;;  %v982_v55 = vmul.f32 1.442695, %v920_v51  ;;  %v984_v56 = vmul.f32 1.442695, %v921_v53 }
 0x1ff   : > { %1835 = vpow2.f32 %v980_v60  ;;  %1250 = vmatprep.mubr.bf16.mxu1 %v1045_v16  ;;  %1020 = vadd.xlane.f32.xlu1 %v1019_v17 }
 0x200   : > { %v1826_v42 = vpop.eup %1825  ;;  %1837 = vpow2.f32 %v982_v55 }
 0x201   : > { %v1828_v21 = vpop.eup %1827  ;;  %1839 = vpow2.f32 %v984_v56  ;;  %1251 = vmatmul.mubr.bf16.gmra.mrb[20].mxu1 %v1044_v39 }
 0x202   : > { %v1830_v22 = vpop.eup %1829  ;;  %v1022_v26 = vadd.f32 %v1828_v21, %v1826_v42 }
 0x203   : > { %v1832_v27 = vpop.eup %1831  ;;  %v1046_v7 = vpack.c.bf16 %v1830_v22, %v1826_v42 }
 0x204   : > { %1023 = vadd.xlane.f32.xlu0 %v1022_v26  ;;  %v1047_v45 = vpack.c.bf16 %v1832_v27, %v1828_v21  ;;  %v1025_v48 = vadd.f32 %v1832_v27, %v1830_v22 }
 0x206   : > { %1258 = vmatprep.mubr.bf16.mxu1 %v1047_v45  ;;  %1026 = vadd.xlane.f32.xlu1 %v1025_v48 }
 0x208   : > { %v1834_v9 = vpop.eup %1833 }
 0x209   : > { %v1836_v15 = vpop.eup %1835  ;;  %1259 = vmatmul.mubr.bf16.gmra.mrb[24].mxu1 %v1046_v7 }
 0x20a   : > { %v1838_v19 = vpop.eup %1837  ;;  %v1028_v29 = vadd.f32 %v1836_v15, %v1834_v9 }
 0x20b   : > { %v1840_v30 = vpop.eup %1839  ;;  %v1048_v24 = vpack.c.bf16 %v1838_v19, %v1834_v9 }
 0x20c   : > { %1029 = vadd.xlane.f32.xlu0 %v1028_v29  ;;  %v1049_v33 = vpack.c.bf16 %v1840_v30, %v1836_v15  ;;  %v1031_v23 = vadd.f32 %v1840_v30, %v1838_v19 }
 0x20e   : > { %1266 = vmatprep.mubr.bf16.mxu1 %v1049_v33  ;;  %1032 = vadd.xlane.f32.xlu1 %v1031_v23 }
 0x211   : > { %1267 = vmatmul.mubr.bf16.gmra.mrb[28].mxu1 %v1048_v24 }
 0x261   : > { %v988_v34 = vpop.xlane.xlu0 %987 }
 0x262   : > { %1841 = vrcp.f32 %v988_v34 }
 0x266   : > { %v991_v35 = vpop.xlane.xlu1 %990 }
 0x267   : > { %1843 = vrcp.f32 %v991_v35 }
 0x269   : > { %v994_v11 = vpop.xlane.xlu0 %993 }
 0x26a   : > { %1845 = vrcp.f32 %v994_v11 }
 0x26c   : > { %v1842_v41 = vpop.eup %1841 }
 0x26e   : > { %v997_v12 = vpop.xlane.xlu1 %996 }
 0x26f   : > { %1847 = vrcp.f32 %v997_v12 }
 0x271   : > { %v1844_v46 = vpop.eup %1843  ;;  %v1000_v44 = vpop.xlane.xlu0 %999 }
 0x272   : > { %1849 = vrcp.f32 %v1000_v44 }
 0x274   : > { %v1003_v31 = vpop.xlane.xlu1 %1002  ;;  %v1846_v58 = vpop.eup %1845 }
 0x275   : > { %1851 = vrcp.f32 %v1003_v31 }
 0x279   : > { %v1848_v0 = vpop.eup %1847  ;;  %v1006_v1 = vpop.xlane.xlu0 %1005 }
 0x27a   : > { %1853 = vrcp.f32 %v1006_v1 }
 0x27c   : > { %v1009_v3 = vpop.xlane.xlu1 %1008  ;;  %v1850_v6 = vpop.eup %1849 }
 0x27d   : > { %1855 = vrcp.f32 %v1009_v3 }
 0x27f   : > { %v1852_v10 = vpop.eup %1851 }
 0x281   : > { %v1012_v52 = vpop.xlane.xlu0 %1011 }
 0x282   : > { %1857 = vrcp.f32 %v1012_v52 }
 0x284   : > { %v1015_v59 = vpop.xlane.xlu1 %1014  ;;  %v1854_v17 = vpop.eup %1853 }
 0x285   : > { %1859 = vrcp.f32 %v1015_v59 }
 0x287   : > { %v1856_v42 = vpop.eup %1855 }
 0x289   : > { %v1018_v21 = vpop.xlane.xlu0 %1017 }
 0x28a   : > { %1861 = vrcp.f32 %v1018_v21 }
 0x28c   : > { %v1021_v26 = vpop.xlane.xlu1 %1020  ;;  %v1858_v9 = vpop.eup %1857 }
 0x28d   : > { %1863 = vrcp.f32 %v1021_v26 }
 0x28f   : > { %v1860_v30 = vpop.eup %1859 }
 0x291   : > { %v1024_v33 = vpop.xlane.xlu0 %1023 }
 0x292   : > { %1865 = vrcp.f32 %v1024_v33 }
 0x293   : > { %v1027_v24 = vpop.xlane.xlu1 %1026 }
 0x294   : > { %1867 = vrcp.f32 %v1027_v24 }
 0x2ac   : > { %v1625_v36 = vpop.f32.mrb[0].mxu1 }
 0x2ad   : > { %v1626_v37 = vpop.f32.mrb[1].mxu1 }
 0x2ae   : > { %v1627_v38 = vadd.f32 %v1626_v37, %v1625_v36  ;;  %v1628_v40 = vpop.f32.mrb[2].mxu1  ;;  %v1862_v36 = vpop.eup %1861 }
 0x2af   : > { %v1629_v25 = vpop.f32.mrb[3].mxu1 }
 0x2b0   : > { %v1291_v28 = vmul.f32 %v1842_v41, %v1627_v38  ;;  %v1630_v43 = vadd.f32 %v1629_v25, %v1628_v40  ;;  %v1864_v41 = vpop.eup %1863  ;;  %v1030_v25 = vpop.xlane.xlu0 %1029 }
 0x2b1   : > { %1869 = vrcp.f32 %v1030_v25 }
 0x2b2   : > { %1307 = vst.msk [vmem:[%s2257_s7] sm:$0xff] %vm544_vm0, %v1291_v28  ;;  %v1292_v49 = vmul.f32 %v1844_v46, %v1630_v43  ;;  %v1033_v43 = vpop.xlane.xlu1 %1032 }
 0x2b3   : > { %1871 = vrcp.f32 %v1033_v43 }
 0x2b4   : > { %1308 = vst.msk [vmem:[%s2257_s7 + $0x8] sm:$0xff] %vm544_vm0, %v1292_v49  ;;  %v1631_v50 = vpop.f32.mrb[4].mxu1 }
 0x2b5   : > { %v1632_v54 = vpop.f32.mrb[5].mxu1 }
 0x2b6   : > { %v1633_v32 = vadd.f32 %v1632_v54, %v1631_v50  ;;  %v1634_v57 = vpop.f32.mrb[6].mxu1  ;;  %v1866_v50 = vpop.eup %1865 }
 0x2b7   : > { %v1635_v61 = vpop.f32.mrb[7].mxu1 }
 0x2b8   : > { %v1293_v62 = vmul.f32 %v1846_v58, %v1633_v32  ;;  %v1636_v63 = vadd.f32 %v1635_v61, %v1634_v57  ;;  %v1868_v58 = vpop.eup %1867 }
 0x2ba   : > { %1309 = vst.msk [vmem:[%s2257_s7 + $0x10] sm:$0xff] %vm544_vm0, %v1293_v62  ;;  %v1294_v2 = vmul.f32 %v1848_v0, %v1636_v63 }
 0x2bc   : > { %1310 = vst.msk [vmem:[%s2257_s7 + $0x18] sm:$0xff] %vm544_vm0, %v1294_v2  ;;  %v1637_v4 = vpop.f32.mrb[8].mxu1  ;;  %v1870_v2 = vpop.eup %1869 }
 0x2bd   : > { %v1638_v8 = vpop.f32.mrb[9].mxu1 }
 0x2be   : > { %v1639_v14 = vadd.f32 %v1638_v8, %v1637_v4  ;;  %v1640_v5 = vpop.f32.mrb[10].mxu1 }
 0x2bf   : > { %v1641_v47 = vpop.f32.mrb[11].mxu1 }
 0x2c0   : > { %v1295_v18 = vmul.f32 %v1850_v6, %v1639_v14  ;;  %v1642_v20 = vadd.f32 %v1641_v47, %v1640_v5  ;;  %v1872_v14 = vpop.eup %1871 }
 0x2c2   : > { %1311 = vst.msk [vmem:[%s2257_s7 + $0x20] sm:$0xff] %vm544_vm0, %v1295_v18  ;;  %v1296_v13 = vmul.f32 %v1852_v10, %v1642_v20 }
 0x2c4   : > { %1312 = vst.msk [vmem:[%s2257_s7 + $0x28] sm:$0xff] %vm544_vm0, %v1296_v13  ;;  %v1643_v60 = vpop.f32.mrb[12].mxu1 }
 0x2c5   : > { %v1644_v51 = vpop.f32.mrb[13].mxu1 }
 0x2c6   : > { %v1645_v53 = vadd.f32 %v1644_v51, %v1643_v60  ;;  %v1646_v16 = vpop.f32.mrb[14].mxu1 }
 0x2c7   : > { %v1647_v55 = vpop.f32.mrb[15].mxu1 }
 0x2c8   : > { %v1297_v56 = vmul.f32 %v1854_v17, %v1645_v53  ;;  %v1648_v39 = vadd.f32 %v1647_v55, %v1646_v16 }
 0x2ca   : > { %1313 = vst.msk [vmem:[%s2257_s7 + $0x30] sm:$0xff] %vm544_vm0, %v1297_v56  ;;  %v1298_v22 = vmul.f32 %v1856_v42, %v1648_v39 }
 0x2cc   : > { %1314 = vst.msk [vmem:[%s2257_s7 + $0x38] sm:$0xff] %vm544_vm0, %v1298_v22  ;;  %v1649_v27 = vpop.f32.mrb[16].mxu1 }
 0x2cd   : > { %v1650_v45 = vpop.f32.mrb[17].mxu1 }
 0x2ce   : > { %v1651_v48 = vadd.f32 %v1650_v45, %v1649_v27  ;;  %v1652_v7 = vpop.f32.mrb[18].mxu1 }
 0x2cf   : > { %v1653_v15 = vpop.f32.mrb[19].mxu1 }
 0x2d0   : > { %v1299_v19 = vmul.f32 %v1858_v9, %v1651_v48  ;;  %v1654_v29 = vadd.f32 %v1653_v15, %v1652_v7 }
 0x2d2   : > { %1315 = vst.msk [vmem:[%s2257_s7 + $0x40] sm:$0xff] %vm544_vm0, %v1299_v19  ;;  %v1300_v23 = vmul.f32 %v1860_v30, %v1654_v29 }
 0x2d4   : > { %1316 = vst.msk [vmem:[%s2257_s7 + $0x48] sm:$0xff] %vm544_vm0, %v1300_v23  ;;  %v1655_v34 = vpop.f32.mrb[20].mxu1 }
 0x2d5   : > { %v1656_v35 = vpop.f32.mrb[21].mxu1 }
 0x2d6   : > { %v1657_v11 = vadd.f32 %v1656_v35, %v1655_v34  ;;  %v1658_v12 = vpop.f32.mrb[22].mxu1 }
 0x2d7   : > { %v1659_v37 = vpop.f32.mrb[23].mxu1 }
 0x2d8   : > { %v1301_v38 = vmul.f32 %v1862_v36, %v1657_v11  ;;  %v1660_v40 = vadd.f32 %v1659_v37, %v1658_v12 }
 0x2da   : > { %1317 = vst.msk [vmem:[%s2257_s7 + $0x50] sm:$0xff] %vm544_vm0, %v1301_v38  ;;  %v1302_v28 = vmul.f32 %v1864_v41, %v1660_v40 }
 0x2dc   : > { %1318 = vst.msk [vmem:[%s2257_s7 + $0x58] sm:$0xff] %vm544_vm0, %v1302_v28  ;;  %v1661_v46 = vpop.f32.mrb[24].mxu1 }
 0x2dd   : > { %v1662_v44 = vpop.f32.mrb[25].mxu1 }
 0x2de   : > { %v1663_v49 = vadd.f32 %v1662_v44, %v1661_v46  ;;  %v1664_v31 = vpop.f32.mrb[26].mxu1 }
 0x2df   : > { %v1665_v54 = vpop.f32.mrb[27].mxu1 }
 0x2e0   : > { %v1303_v32 = vmul.f32 %v1866_v50, %v1663_v49  ;;  %v1666_v57 = vadd.f32 %v1665_v54, %v1664_v31 }
 0x2e2   : > { %1319 = vst.msk [vmem:[%s2257_s7 + $0x60] sm:$0xff] %vm544_vm0, %v1303_v32  ;;  %v1304_v61 = vmul.f32 %v1868_v58, %v1666_v57 }
 0x2e4   : > { %1320 = vst.msk [vmem:[%s2257_s7 + $0x68] sm:$0xff] %vm544_vm0, %v1304_v61  ;;  %v1667_v62 = vpop.f32.mrb[28].mxu1 }
 0x2e5   : > { %v1668_v63 = vpop.f32.mrb[29].mxu1 }
 0x2e6   : > { %v1669_v0 = vadd.f32 %v1668_v63, %v1667_v62  ;;  %v1670_v1 = vpop.f32.mrb[30].mxu1 }
 0x2e7   : > { %v1671_v3 = vpop.f32.mrb[31].mxu1 }
 0x2e8   : > { %v1305_v4 = vmul.f32 %v1870_v2, %v1669_v0  ;;  %v1672_v8 = vadd.f32 %v1671_v3, %v1670_v1 }
 0x2ea   : > { %1321 = vst.msk [vmem:[%s2257_s7 + $0x70] sm:$0xff] %vm544_vm0, %v1305_v4  ;;  %v1306_v5 = vmul.f32 %v1872_v14, %v1672_v8 }
 0x2ec   : > { %1322 = vst.msk [vmem:[%s2257_s7 + $0x78] sm:$0xff] %vm544_vm0, %v1306_v5 }
 0x2ed PF: > { %s14_s21 = sadd.s32 1, %s1927_s21   ;;  %s2317_s15 = smov %s1915_s18 }
 0x2ee   : > { %p11_p9 = scmp.ge.s32.totalorder %s14_s21, 10   ;;  %s2318_s16 = smov %s1919_s19 }
 0x2ef   : > { %s2319_s17 = smov %s1923_s20  ;;  %s2320_s18 = smov %s2324_s22 }
 0x2f0   : > { %s2321_s19 = smov %s2328_s23  ;;  %s2322_s20 = smov %s2332_s24 }
 0x2f1   :  { %13 = sbr.rel (!%p11_p9) target bundleno = 4 (0x4), region = 75 }

</bundles_post_ra>
